<compile_context>
chip_gen: v7x
topology: tpu7x:2x2x1
jax: 0.10.0
libtpu: 0.0.40
codegen_flags: <defaults>
</compile_context>

<pallas_src>
import functools

import jax
import jax.numpy as jnp
from jax.experimental import pallas as pl
from jax.experimental.pallas import tpu as pltpu


_TB_MAX = 2048   # max batch-tile rows per grid step
_OUT = 2         # real output width of dense_final


def _round_up(x, m):
    return (x + m - 1) // m * m


def _choose_tb(batch):
    """Pick the batch tile size (static, shapes are known under jit)."""
    if batch > _TB_MAX:
        return _TB_MAX
    if batch >= 1024:
        # Split into >= 2 blocks so v7x's 2nd TensorCore gets work.
        return _round_up(pl.cdiv(batch, 2), 8)
    # Single full-extent block (always layout-legal, even if B % 8 != 0).
    return batch


def _mlp_kernel(x_ref, w1_ref, b1_ref, w2_ref, b2_ref, w3_ref, b3_ref, o_ref):
    """Fused 3-layer MLP with ReLU after every layer (incl. final).

    Shapes inside the kernel:
      x:  (TB, F) f32   w1: (F,  Hp) bf16   b1: (1, Hp) f32
                        w2: (Hp, Hp) bf16   b2: (1, Hp) f32
                        w3: (Hp, Op) bf16   b3: (1, Op) f32
      out: (TB, 2) f32
    Padded lanes of every intermediate are exactly zero (zero-padded weights
    and biases + ReLU), and only the first 2 output lanes are stored.
    """
    x = x_ref[...].astype(jnp.bfloat16)

    h1 = jnp.dot(x, w1_ref[...], preferred_element_type=jnp.float32) + b1_ref[...]
    h1 = jnp.maximum(h1, 0.0).astype(jnp.bfloat16)

    h2 = jnp.dot(h1, w2_ref[...], preferred_element_type=jnp.float32) + b2_ref[...]
    h2 = jnp.maximum(h2, 0.0).astype(jnp.bfloat16)

    h3 = jnp.dot(h2, w3_ref[...], preferred_element_type=jnp.float32) + b3_ref[...]
    h3 = jnp.maximum(h3, 0.0)

    # TODO(synk): training-mode dropout (p=0.5) not applied; this matches
    # func.dropout(x, training=False) (eval-mode) semantics.
    o_ref[...] = h3[:, :_OUT].astype(o_ref.dtype)


def prepare_params(params, n_features):
    """One-time parameter prep: transpose to (in, out), pad to lane width, bf16.

    params holds PyTorch-convention f32 tensors:
      w1 (2F, F), b1 (2F,), w2 (2F, 2F), b2 (2F,), w3 (2, 2F), b3 (2,)
    """
    F = n_features
    H = 2 * F
    Hp = max(_round_up(H, 128), 128)   # padded hidden width (lane-dense)
    Op = 128                           # padded final-matmul width (MXU-friendly)

    bf16, f32 = jnp.bfloat16, jnp.float32
    w1p = jnp.zeros((F, Hp), bf16).at[:, :H].set(params["w1"].T.astype(bf16))
    b1p = jnp.zeros((1, Hp), f32).at[:, :H].set(params["b1"].astype(f32))
    w2p = jnp.zeros((Hp, Hp), bf16).at[:H, :H].set(params["w2"].T.astype(bf16))
    b2p = jnp.zeros((1, Hp), f32).at[:, :H].set(params["b2"].astype(f32))
    w3p = jnp.zeros((Hp, Op), bf16).at[:H, :_OUT].set(params["w3"].T.astype(bf16))
    b3p = jnp.zeros((1, Op), f32).at[:, :_OUT].set(params["b3"].astype(f32))

    return {"w1": w1p, "b1": b1p, "w2": w2p, "b2": b2p, "w3": w3p, "b3": b3p}


@jax.jit
def net_forward(x, prepared):
    """Run the fused MLP kernel. x: (B, F) float32. Returns (B, 2) float32."""
    B, F = x.shape
    Hp = prepared["w2"].shape[0]
    Op = prepared["w3"].shape[1]

    TB = _choose_tb(B)
    num_blocks = pl.cdiv(B, TB)        # last block may be partial (no jnp.pad)

    const = lambda shape: pl.BlockSpec(shape, lambda i: (0,) * len(shape))

    out = pl.pallas_call(
        _mlp_kernel,
        out_shape=jax.ShapeDtypeStruct((B, _OUT), jnp.float32),
        grid=(num_blocks,),
        in_specs=[
            pl.BlockSpec((TB, F), lambda i: (i, 0)),   # x: batch-tiled
            const((F, Hp)), const((1, Hp)),            # w1, b1 (VMEM resident)
            const((Hp, Hp)), const((1, Hp)),           # w2, b2
            const((Hp, Op)), const((1, Op)),           # w3, b3
        ],
        out_specs=pl.BlockSpec((TB, _OUT), lambda i: (i, 0)),
        compiler_params=pltpu.CompilerParams(
            dimension_semantics=("parallel",),          # megacore on v7x
            vmem_limit_bytes=32 * 1024 * 1024,          # safe on v5e/v6e/v7x
        ),
    )(x, prepared["w1"], prepared["b1"],
         prepared["w2"], prepared["b2"],
         prepared["w3"], prepared["b3"])

    return out


def init_params(key, n_features):
    """Deterministic init mimicking nn.Linear's U(-1/sqrt(fan_in), 1/sqrt(fan_in))."""
    F, H, O = n_features, 2 * n_features, 2
    keys = jax.random.split(key, 6)

    def uni(k, shape, fan_in):
        bound = 1.0 / jnp.sqrt(fan_in)
        return jax.random.uniform(k, shape, jnp.float32, -bound, bound)

    return {
        "w1": uni(keys[0], (H, F), F), "b1": uni(keys[1], (H,), F),
        "w2": uni(keys[2], (H, H), H), "b2": uni(keys[3], (H,), H),
        "w3": uni(keys[4], (O, H), H), "b3": uni(keys[5], (O,), H),
    }


def _reference(x, p):
    h1 = jnp.maximum(x @ p["w1"].T + p["b1"], 0.0)
    h2 = jnp.maximum(h1 @ p["w2"].T + p["b2"], 0.0)
    h3 = jnp.maximum(h2 @ p["w3"].T + p["b3"], 0.0)
    return h3


if __name__ == "__main__":
    key = jax.random.PRNGKey(0)
    k_x, k_p = jax.random.split(key)

    batch = 8
    n_features = 32

    x = jax.random.normal(k_x, (batch, n_features), dtype=jnp.float32)
    params = init_params(k_p, n_features)

    # One-time parameter prep (transpose + zero-pad + bf16 cast).
    prepared = prepare_params(params, n_features)

    out = net_forward(x, prepared)
    out = jax.block_until_ready(out)

    ref = _reference(x, params)  # f32 reference
    assert out.shape == (batch, 2), out.shape
    # bf16 matmuls vs f32 reference -> loosened tolerance.
    assert jnp.allclose(out, ref, atol=5e-2, rtol=5e-2), (
        float(jnp.max(jnp.abs(out - ref))))

    print("KERNEL_OK")
</pallas_src>

<mosaic_0001>
module attributes {stable_mosaic.version = 11 : i64} {
  func.func @_mlp_kernel(%arg0: i32, %arg1: memref<8x32xf32, #tpu.memory_space<vmem>>, %arg2: memref<32x128xbf16, #tpu.memory_space<vmem>>, %arg3: memref<1x128xf32, #tpu.memory_space<vmem>>, %arg4: memref<128x128xbf16, #tpu.memory_space<vmem>>, %arg5: memref<1x128xf32, #tpu.memory_space<vmem>>, %arg6: memref<128x128xbf16, #tpu.memory_space<vmem>>, %arg7: memref<1x128xf32, #tpu.memory_space<vmem>>, %arg8: memref<8x2xf32, #tpu.memory_space<vmem>>) attributes {dimension_semantics = [#tpu.dimension_semantics<parallel>], iteration_bounds = array<i64: 1>, scalar_prefetch = 0 : i64, scratch_operands = 0 : i64, tpu.core_type = #tpu.core_type<tc>, window_params = [{transform_indices = @transform_0, window_bounds = array<i64: 8, 32>}, {pipeline_mode = #tpu.pipeline_mode<synchronous>, transform_indices = @transform_1, window_bounds = array<i64: 32, 128>}, {pipeline_mode = #tpu.pipeline_mode<synchronous>, transform_indices = @transform_2, window_bounds = array<i64: 1, 128>}, {pipeline_mode = #tpu.pipeline_mode<synchronous>, transform_indices = @transform_3, window_bounds = array<i64: 128, 128>}, {pipeline_mode = #tpu.pipeline_mode<synchronous>, transform_indices = @transform_4, window_bounds = array<i64: 1, 128>}, {pipeline_mode = #tpu.pipeline_mode<synchronous>, transform_indices = @transform_5, window_bounds = array<i64: 128, 128>}, {pipeline_mode = #tpu.pipeline_mode<synchronous>, transform_indices = @transform_6, window_bounds = array<i64: 1, 128>}, {transform_indices = @transform_7, window_bounds = array<i64: 8, 2>}]} {
    %c0 = arith.constant 0 : index
    %c0_0 = arith.constant 0 : index
    %0 = vector.load %arg1[%c0, %c0_0] : memref<8x32xf32, #tpu.memory_space<vmem>>, vector<8x32xf32>
    %1 = arith.truncf %0 : vector<8x32xf32> to vector<8x32xbf16>
    %c0_1 = arith.constant 0 : index
    %c0_2 = arith.constant 0 : index
    %2 = vector.load %arg2[%c0_1, %c0_2] : memref<32x128xbf16, #tpu.memory_space<vmem>>, vector<32x128xbf16>
    %cst = arith.constant dense<0.000000e+00> : vector<8x128xf32>
    %3 = tpu.matmul %1, %2, %cst {dimension_numbers = #tpu.dot_dimension_numbers<[1], [0], [0], [1], [0, 0, 1, 1], [], []>} : vector<8x32xbf16>, vector<32x128xbf16>, vector<8x128xf32> -> vector<8x128xf32>
    %c0_3 = arith.constant 0 : index
    %c0_4 = arith.constant 0 : index
    %4 = vector.load %arg3[%c0_3, %c0_4] : memref<1x128xf32, #tpu.memory_space<vmem>>, vector<1x128xf32>
    %5 = vector.broadcast %4 : vector<1x128xf32> to vector<8x128xf32>
    %6 = arith.addf %3, %5 : vector<8x128xf32>
    %cst_5 = arith.constant 0.000000e+00 : f32
    %7 = vector.broadcast %cst_5 : f32 to vector<8x128xf32>
    %8 = arith.maximumf %6, %7 : vector<8x128xf32>
    %9 = arith.truncf %8 : vector<8x128xf32> to vector<8x128xbf16>
    %c0_6 = arith.constant 0 : index
    %c0_7 = arith.constant 0 : index
    %10 = vector.load %arg4[%c0_6, %c0_7] : memref<128x128xbf16, #tpu.memory_space<vmem>>, vector<128x128xbf16>
    %cst_8 = arith.constant dense<0.000000e+00> : vector<8x128xf32>
    %11 = tpu.matmul %9, %10, %cst_8 {dimension_numbers = #tpu.dot_dimension_numbers<[1], [0], [0], [1], [0, 0, 1, 1], [], []>} : vector<8x128xbf16>, vector<128x128xbf16>, vector<8x128xf32> -> vector<8x128xf32>
    %c0_9 = arith.constant 0 : index
    %c0_10 = arith.constant 0 : index
    %12 = vector.load %arg5[%c0_9, %c0_10] : memref<1x128xf32, #tpu.memory_space<vmem>>, vector<1x128xf32>
    %13 = vector.broadcast %12 : vector<1x128xf32> to vector<8x128xf32>
    %14 = arith.addf %11, %13 : vector<8x128xf32>
    %cst_11 = arith.constant 0.000000e+00 : f32
    %15 = vector.broadcast %cst_11 : f32 to vector<8x128xf32>
    %16 = arith.maximumf %14, %15 : vector<8x128xf32>
    %17 = arith.truncf %16 : vector<8x128xf32> to vector<8x128xbf16>
    %c0_12 = arith.constant 0 : index
    %c0_13 = arith.constant 0 : index
    %18 = vector.load %arg6[%c0_12, %c0_13] : memref<128x128xbf16, #tpu.memory_space<vmem>>, vector<128x128xbf16>
    %cst_14 = arith.constant dense<0.000000e+00> : vector<8x128xf32>
    %19 = tpu.matmul %17, %18, %cst_14 {dimension_numbers = #tpu.dot_dimension_numbers<[1], [0], [0], [1], [0, 0, 1, 1], [], []>} : vector<8x128xbf16>, vector<128x128xbf16>, vector<8x128xf32> -> vector<8x128xf32>
    %c0_15 = arith.constant 0 : index
    %c0_16 = arith.constant 0 : index
    %20 = vector.load %arg7[%c0_15, %c0_16] : memref<1x128xf32, #tpu.memory_space<vmem>>, vector<1x128xf32>
    %21 = vector.broadcast %20 : vector<1x128xf32> to vector<8x128xf32>
    %22 = arith.addf %19, %21 : vector<8x128xf32>
    %cst_17 = arith.constant 0.000000e+00 : f32
    %23 = vector.broadcast %cst_17 : f32 to vector<8x128xf32>
    %24 = arith.maximumf %22, %23 : vector<8x128xf32>
    %25 = vector.extract_strided_slice %24 {offsets = [0, 0], sizes = [8, 2], strides = [1, 1]} : vector<8x128xf32> to vector<8x2xf32>
    %c0_18 = arith.constant 0 : index
    %c0_19 = arith.constant 0 : index
    %26 = vector.load %arg8[%c0_18, %c0_19] : memref<8x2xf32, #tpu.memory_space<vmem>>, vector<8x2xf32>
    tpu.vector_store %arg8[%c0_18, %c0_19], %25 {strides = array<i32>} : memref<8x2xf32, #tpu.memory_space<vmem>>, vector<8x2xf32>,
    return
  }
  func.func @transform_0(%arg0: i32) -> (i32, i32) {
    %c0_i32 = arith.constant 0 : i32
    %c0_i32_0 = arith.constant 0 : i32
    return %arg0, %c0_i32 : i32, i32
  }
  func.func @transform_1(%arg0: i32) -> (i32, i32) {
    %c0_i32 = arith.constant 0 : i32
    %c0_i32_0 = arith.constant 0 : i32
    %c0_i32_1 = arith.constant 0 : i32
    return %c0_i32, %c0_i32_0 : i32, i32
  }
  func.func @transform_2(%arg0: i32) -> (i32, i32) {
    %c0_i32 = arith.constant 0 : i32
    %c0_i32_0 = arith.constant 0 : i32
    %c0_i32_1 = arith.constant 0 : i32
    return %c0_i32, %c0_i32_0 : i32, i32
  }
  func.func @transform_3(%arg0: i32) -> (i32, i32) {
    %c0_i32 = arith.constant 0 : i32
    %c0_i32_0 = arith.constant 0 : i32
    %c0_i32_1 = arith.constant 0 : i32
    return %c0_i32, %c0_i32_0 : i32, i32
  }
  func.func @transform_4(%arg0: i32) -> (i32, i32) {
    %c0_i32 = arith.constant 0 : i32
    %c0_i32_0 = arith.constant 0 : i32
    %c0_i32_1 = arith.constant 0 : i32
    return %c0_i32, %c0_i32_0 : i32, i32
  }
  func.func @transform_5(%arg0: i32) -> (i32, i32) {
    %c0_i32 = arith.constant 0 : i32
    %c0_i32_0 = arith.constant 0 : i32
    %c0_i32_1 = arith.constant 0 : i32
    return %c0_i32, %c0_i32_0 : i32, i32
  }
  func.func @transform_6(%arg0: i32) -> (i32, i32) {
    %c0_i32 = arith.constant 0 : i32
    %c0_i32_0 = arith.constant 0 : i32
    %c0_i32_1 = arith.constant 0 : i32
    return %c0_i32, %c0_i32_0 : i32, i32
  }
  func.func @transform_7(%arg0: i32) -> (i32, i32) {
    %c0_i32 = arith.constant 0 : i32
    %c0_i32_0 = arith.constant 0 : i32
    return %arg0, %c0_i32 : i32, i32
  }
}

</mosaic_0001>

<bundles_post_ra>
// kernel: net_forward.1
= control target key start
LH: loop header
LB: loop body
LE: loop exit
PB: predicated region body
PF: predicated region fallthrough
CT: control target
= control target key end

     0   :  { %12 = vsyncpa [#allocation3], 0  ;;  %s737_s0 = inlined_call_operand.hbm [shape: f32[8,32], index: 0, kind: input, shape index: {}]   ;;  %s738_s1 = inlined_call_operand.hbm [shape: bf16[32,128], index: 1, kind: input, shape index: {}]   ;;  %s739_s2 = inlined_call_operand.vmem [shape: f32[1,128], index: 2, kind: input, shape index: {}]   ;;  %s740_s3 = inlined_call_operand.hbm [shape: bf16[128,128], index: 3, kind: input, shape index: {}]   ;;  %s741_s4 = inlined_call_operand.vmem [shape: f32[1,128], index: 4, kind: input, shape index: {}]   ;;  %s742_s5 = inlined_call_operand.hbm [shape: bf16[128,128], index: 5, kind: input, shape index: {}]   ;;  %s743_s6 = inlined_call_operand.vmem [shape: f32[1,128], index: 6, kind: input, shape index: {}]   ;;  %s744_s7 = inlined_call_operand.vmem [shape: f32[8,2], index: 7, kind: output, shape index: {}]  }
   0x1   :  { %13 = vsyncpa [#allocation5], 0 }
   0x2   :  { %14 = vsyncpa [#allocation8], 0  ;;  %s596_s24 = smov [#allocation4]   ;;  %s502_s28 = scalar_lea.hbm %s738_s1, 256 }
   0x3   :  { %s30_s25 = sshll.u32 %s596_s24, 4  ;;  %p503_p0 = scmp.ne.s32.totalorder %s738_s1, %s502_s28  ;;  %s31_s25 = int_to_ptr.vmem [resolvable:$true] %s30_s25 }
   0x4   :  { %p506_p1 = scmp.lt.u32.totalorder %s502_s28, %s738_s1 }
   0x6   :  { %p508_p2 = pnand %p506_p1, %p503_p0 }
   0x8   :  { %511 = shalt.err (!%p508_p2)
}
   0x9   :  { %s512_s10 = scalar_lea.vmem %s31_s25, 256  ;;  %p517_p4 = scmp.lt.s32.totalorder %s31_s25, %s31_s25 }
   0xa   :  { %p513_p3 = scmp.ne.s32.totalorder %s31_s25, %s512_s10  ;;  %p518_p5 = scmp.lt.s32.totalorder %s512_s10, %s512_s10 }
   0xc   :  { %p519_p6 = por %p518_p5, %p517_p4 }
   0xe   :  { %p520_p7 = pnand %p519_p6, %p513_p3 }
  0x10   :  { %523 = shalt.err (!%p520_p7)
}
  0x11   :  { %s597_s11 = smov 64   ;;  %s598_s12 = smov 4  }
  0x12   :  { %36 = dma.hbm_to_vmem [thread:$0]  %s738_s1, 256, %s31_s25, [#allocation5], %s597_s11, %s597_s11, %s598_s12  }
  0x13   :  { %s599_s15 = smov [#allocation2]   ;;  %s600_s17 = smov [#allocation6]  }
  0x14   :  { %s21_s16 = sshll.u32 %s599_s15, 4  ;;  %s44_s18 = sshll.u32 %s600_s17, 4  ;;  %s22_s16 = int_to_ptr.vmem [resolvable:$true] %s21_s16  ;;  %s45_s18 = int_to_ptr.vmem [resolvable:$true] %s44_s18 }
  0x15   :  { %s524_s21 = scalar_lea.hbm %s737_s0, 128 }
  0x16   :  { %p525_p8 = scmp.ne.s32.totalorder %s737_s0, %s524_s21  ;;  %p528_p9 = scmp.lt.u32.totalorder %s524_s21, %s737_s0 }
  0x18   :  { %p530_p10 = pnand %p528_p9, %p525_p8 }
  0x1a   :  { %533 = shalt.err (!%p530_p10)
}
  0x1b   :  { %s534_s1 = scalar_lea.vmem %s22_s16, 128  ;;  %p539_p12 = scmp.lt.s32.totalorder %s22_s16, %s22_s16 }
  0x1c   :  { %p535_p11 = scmp.ne.s32.totalorder %s22_s16, %s534_s1  ;;  %p540_p13 = scmp.lt.s32.totalorder %s534_s1, %s534_s1 }
  0x1e   :  { %p541_p0 = por %p540_p13, %p539_p12 }
  0x20   :  { %p542_p1 = pnand %p541_p0, %p535_p11 }
  0x22   :  { %545 = shalt.err (!%p542_p1)
}
  0x23   :  { %24 = dma.hbm_to_vmem [thread:$0]  %s737_s0, 128, %s22_s16, [#allocation3]  }
  0x24   :  { %s546_s30 = scalar_lea.hbm %s740_s3, 1024 }
  0x25   :  { %p547_p2 = scmp.ne.s32.totalorder %s740_s3, %s546_s30  ;;  %p550_p3 = scmp.lt.u32.totalorder %s546_s30, %s740_s3 }
  0x27   :  { %p552_p4 = pnand %p550_p3, %p547_p2 }
  0x29   :  { %555 = shalt.err (!%p552_p4)
}
  0x2a   :  { %s556_s14 = scalar_lea.vmem %s45_s18, 1024  ;;  %p561_p6 = scmp.lt.s32.totalorder %s45_s18, %s45_s18 }
  0x2b   :  { %p557_p5 = scmp.ne.s32.totalorder %s45_s18, %s556_s14  ;;  %p562_p7 = scmp.lt.s32.totalorder %s556_s14, %s556_s14 }
  0x2d   :  { %p563_p8 = por %p562_p7, %p561_p6 }
  0x2f   :  { %p564_p9 = pnand %p563_p8, %p557_p5 }
  0x31   :  { %567 = shalt.err (!%p564_p9)
}
  0x32   :  { %50 = dma.hbm_to_vmem [thread:$0]  %s740_s3, 1024, %s45_s18, [#allocation5], %s597_s11, %s597_s11, %s598_s12  }
  0x33   :  { %s601_s16 = smov [#allocation7]   ;;  %s568_s21 = scalar_lea.hbm %s742_s5, 1024 }
  0x34   :  { %s58_s17 = sshll.u32 %s601_s16, 4  ;;  %p569_p10 = scmp.ne.s32.totalorder %s742_s5, %s568_s21  ;;  %s59_s17 = int_to_ptr.vmem [resolvable:$true] %s58_s17 }
  0x35   :  { %p572_p11 = scmp.lt.u32.totalorder %s568_s21, %s742_s5 }
  0x37   :  { %p574_p12 = pnand %p572_p11, %p569_p10 }
  0x39   :  { %577 = shalt.err (!%p574_p12)
}
  0x3a   :  { %s578_s1 = scalar_lea.vmem %s59_s17, 1024  ;;  %p583_p0 = scmp.lt.s32.totalorder %s59_s17, %s59_s17 }
  0x3b   :  { %p579_p13 = scmp.ne.s32.totalorder %s59_s17, %s578_s1  ;;  %p584_p1 = scmp.lt.s32.totalorder %s578_s1, %s578_s1 }
  0x3d   :  { %p585_p2 = por %p584_p1, %p583_p0 }
  0x3f   :  { %p586_p3 = pnand %p585_p2, %p579_p13 }
  0x41   :  { %589 = shalt.err (!%p586_p3)
}
  0x42   :  { %64 = dma.hbm_to_vmem [thread:$0]  %s742_s5, 1024, %s59_s17, [#allocation8], %s597_s11, %s597_s11, %s598_s12  }
  0x43   :  { %590 = dma.done.wait [#allocation3], 128  }
  0x44   :  { %591 = vsyncadd [#allocation3], 4294967168 }
  0x45   :  { %592 = dma.done.wait [#allocation5], 1280  }
  0x46   :  { %593 = vsyncadd [#allocation5], 4294966016 }
  0x47   :  { %594 = dma.done.wait [#allocation8], 1024  }
  0x48   :  { %595 = vsyncadd [#allocation8], 4294966272  ;;  %v602_v0 = vmov 0.0   ;;  %vm603_vm0 = vmmov 0   ;;  %v484_v1 = vld [vmem:[#allocation4] sm:$0xff]   ;;  %v485_v2 = vld [vmem:[#allocation4 + $0x8] sm:$0xff]  }
  0x49   :  { %428 = vmatprep.subr.bf16.mxu0 %v602_v0  ;;  %432 = vmatprep.mubr.msk.bf16.mxu0 %vm603_vm0, %v602_v0  ;;  %v80_v3 = vld [vmem:[#allocation2] sm:$0xff]  ;;  %v486_v4 = vld [vmem:[#allocation6] sm:$0xff]   ;;  %vm105_vm1 = vcmask 261120   ;;  %v488_v7 = vld [vmem:[#allocation6 + $0x10] sm:$0xff]   ;;  %vm376_vm2 = vcmask 15360  }
  0x4a   :  { %436 = vmatprep.subr.bf16.mxu1 %v602_v0  ;;  %452 = vmatprep.mubr.msk.bf16.mxu1 %vm603_vm0, %v602_v0  ;;  %v81_v5 = vpack.c.bf16 %v80_v3, %v80_v3  ;;  %v487_v6 = vld [vmem:[#allocation6 + $0x8] sm:$0xff]   ;;  %v489_v8 = vld [vmem:[#allocation6 + $0x18] sm:$0xff]   ;;  %v490_v9 = vld [vmem:[#allocation6 + $0x20] sm:$0xff]  }
  0x4b   :  { %429 = vmatpush3.bf16.msra.mxu0 %v484_v1  ;;  %437 = vmatpush3.bf16.msra.mxu1 %v486_v4  ;;  %v491_v10 = vld [vmem:[#allocation6 + $0x28] sm:$0xff]   ;;  %v492_v11 = vld [vmem:[#allocation6 + $0x30] sm:$0xff]   ;;  %v493_v12 = vld [vmem:[#allocation6 + $0x38] sm:$0xff]  }
  0x4c   :  { %430 = vmatprep.subr.bf16.mxu0 %v602_v0  ;;  %438 = vmatprep.subr.bf16.mxu1 %v602_v0  ;;  %v494_v13 = vld [vmem:[#allocation7] sm:$0xff]   ;;  %v495_v14 = vld [vmem:[#allocation7 + $0x8] sm:$0xff]   ;;  %v496_v15 = vld [vmem:[#allocation7 + $0x10] sm:$0xff]  }
  0x4d   :  { %v497_v16 = vld [vmem:[#allocation7 + $0x18] sm:$0xff]   ;;  %v498_v17 = vld [vmem:[#allocation7 + $0x20] sm:$0xff]   ;;  %v499_v18 = vld [vmem:[#allocation7 + $0x28] sm:$0xff]  }
  0x4e   :  { %v385_v19 = vld [vmem:[%s739_s2] ss:$0 sm:$0xff]  ;;  %v500_v27 = vld [vmem:[#allocation7 + $0x30] sm:$0xff]   ;;  %v501_v28 = vld [vmem:[#allocation7 + $0x38] sm:$0xff]  }
  0x4f   :  { %431 = vmatpush3.bf16.msra.mxu0 %v485_v2  ;;  %439 = vmatpush3.bf16.msra.mxu1 %v487_v6  ;;  %v389_v29 = vld [vmem:[%s741_s4] ss:$0 sm:$0xff] }
  0x50   :  { %456 = vmatprep.subr.bf16.mxu0 %v602_v0  ;;  %440 = vmatprep.subr.bf16.mxu1 %v602_v0  ;;  %v398_v37 = vld [vmem:[%s743_s6] ss:$0 sm:$0xff] }
  0x52   :  { %433 = vmatmul.mubr.msk.bf16.vlgmr.msra.gmra.mrb[0].mxu0 %vm105_vm1, %v81_v5 }
  0x53   :  { %472 = vmatprep.mubr.msk.bf16.mxu0 %vm603_vm0, %v602_v0  ;;  %441 = vmatpush3.bf16.msra.mxu1 %v488_v7 }
  0x54   :  { %442 = vmatprep.subr.bf16.mxu1 %v602_v0  ;;  %457 = vmatpush3.bf16.msra.mxu0 %v494_v13 }
  0x55   :  { %458 = vmatprep.subr.bf16.mxu0 %v602_v0 }
  0x57   :  { %443 = vmatpush3.bf16.msra.mxu1 %v489_v8 }
  0x58   :  { %444 = vmatprep.subr.bf16.mxu1 %v602_v0  ;;  %459 = vmatpush3.bf16.msra.mxu0 %v495_v14 }
  0x59   :  { %460 = vmatprep.subr.bf16.mxu0 %v602_v0 }
  0x5b   :  { %445 = vmatpush3.bf16.msra.mxu1 %v490_v9 }
  0x5c   :  { %446 = vmatprep.subr.bf16.mxu1 %v602_v0  ;;  %461 = vmatpush3.bf16.msra.mxu0 %v496_v15 }
  0x5d   :  { %462 = vmatprep.subr.bf16.mxu0 %v602_v0 }
  0x5f   :  { %447 = vmatpush3.bf16.msra.mxu1 %v491_v10 }
  0x60   :  { %448 = vmatprep.subr.bf16.mxu1 %v602_v0  ;;  %463 = vmatpush3.bf16.msra.mxu0 %v497_v16 }
  0x61   :  { %464 = vmatprep.subr.bf16.mxu0 %v602_v0 }
  0x63   :  { %449 = vmatpush3.bf16.msra.mxu1 %v492_v11 }
  0x64   :  { %450 = vmatprep.subr.bf16.mxu1 %v602_v0  ;;  %465 = vmatpush3.bf16.msra.mxu0 %v498_v17 }
  0x65   :  { %466 = vmatprep.subr.bf16.mxu0 %v602_v0 }
  0x67   :  { %451 = vmatpush3.bf16.msra.mxu1 %v493_v12 }
  0x68   :  { %467 = vmatpush3.bf16.msra.mxu0 %v499_v18 }
  0x69   :  { %468 = vmatprep.subr.bf16.mxu0 %v602_v0 }
  0x6c   :  { %469 = vmatpush3.bf16.msra.mxu0 %v500_v27 }
  0x6d   :  { %470 = vmatprep.subr.bf16.mxu0 %v602_v0 }
  0x70   :  { %471 = vmatpush3.bf16.msra.mxu0 %v501_v28 }
 0x125   :  { %v143_v20 = vpop.f32.mrb[0].mxu0 }
 0x126   :  { %v144_v21 = vadd.f32 %v385_v19, %v143_v20  ;;  %v434_v22 = vpop.f32.mrb[1].mxu0 }
 0x127   :  { %v146_v23 = vpop.f32.mrb[2].mxu0 }
 0x128   :  { %v149_v24 = vmax.f32 %v144_v21, 0.0  ;;  %v435_v25 = vpop.f32.mrb[3].mxu0 }
 0x12a   :  { %v150_v26 = vpack.c.bf16 %v149_v24, %v149_v24 }
 0x12c   :  { %453 = vmatmul.mubr.bf16.vlgmr.msra.gmra.mrb[0].mxu1 %v150_v26 }
 0x1ff   :  { %v256_v30 = vpop.f32.mrb[0].mxu1 }
 0x200   :  { %v257_v31 = vadd.f32 %v389_v29, %v256_v30  ;;  %v454_v32 = vpop.f32.mrb[1].mxu1 }
 0x201   :  { %v259_v33 = vpop.f32.mrb[2].mxu1 }
 0x202   :  { %v262_v34 = vmax.f32 %v257_v31, 0.0  ;;  %v455_v35 = vpop.f32.mrb[3].mxu1 }
 0x204   :  { %v263_v36 = vpack.c.bf16 %v262_v34, %v262_v34 }
 0x206   :  { %473 = vmatmul.mubr.bf16.vlgmr.msra.gmra.mrb[4].mxu0 %v263_v36 }
 0x2d9   :  { %v369_v38 = vpop.f32.mrb[4].mxu0 }
 0x2da   :  { %v370_v39 = vadd.f32 %v398_v37, %v369_v38  ;;  %v474_v40 = vpop.f32.mrb[5].mxu0 }
 0x2db   :  { %v372_v41 = vpop.f32.mrb[6].mxu0 }
 0x2dc   :  { %v375_v42 = vmax.f32 %v370_v39, 0.0  ;;  %v475_v43 = vpop.f32.mrb[7].mxu0 }
 0x2de   :  { %377 = vst.msk [vmem:[%s744_s7] sm:$0xff] %vm376_vm2, %v375_v42 }
 0x2df   :  { %382 = vsyncpa [#allocation3], 1 }
 0x2e0   :  { %383 = vsyncpa [#allocation5], 1 }
 0x2e1   :  { %384 = vsyncpa [#allocation8], 1 }

</bundles_post_ra>
